<compile_context>
chip_gen: v7x
topology: tpu7x:2x2x1
jax: 0.10.0
libtpu: 0.0.40
codegen_flags: <defaults>
</compile_context>

<pallas_src>
import functools
import numpy as np
import jax
import jax.numpy as jnp
from jax.experimental import pallas as pl
from jax.experimental.pallas import tpu as pltpu


# ----------------------------------------------------------------------------
# Parameter (buffer) construction — identical math to the PyTorch module.
# ----------------------------------------------------------------------------
def get_sinusoid_encoding_table(n_position: int, d_hid: int, base: float) -> np.ndarray:
    """Sinusoid position encoding table, matching the torch reference exactly."""
    def get_position_angle_vec(position):
        return [
            position / np.power(base, 2 * (hid_j // 2) / d_hid)
            for hid_j in range(d_hid)
        ]

    table = np.array([get_position_angle_vec(p) for p in range(n_position)])
    table[:, 0::2] = np.sin(table[:, 0::2])
    table[:, 1::2] = np.cos(table[:, 1::2])
    return table.astype(np.float32)  # FloatTensor in torch


# ----------------------------------------------------------------------------
# Hardware queries (trace-time, best-effort with conservative fallbacks).
# ----------------------------------------------------------------------------
def _vmem_capacity_bytes() -> int:
    try:
        return int(pltpu.get_tpu_info().vmem_capacity_bytes)
    except Exception:
        pass
    try:
        kind = jax.devices()[0].device_kind.lower()
    except Exception:
        kind = ""
    if "v7" in kind:
        return 64 << 20
    if "v5" in kind or "v6" in kind:
        return 128 << 20
    return 64 << 20  # conservative default is safe on every generation


def _num_tensorcores() -> int:
    """TensorCores a 'parallel' grid axis can be sharded across on this chip."""
    try:
        kind = jax.devices()[0].device_kind.lower()
    except Exception:
        return 1
    for tag in ("v7", "v5p", "v4", "v3", "v2"):
        if tag in kind:
            return 2
    return 1  # v5e / v6e: 1 TC per chip — never split slabs just for "balance"


# ----------------------------------------------------------------------------
# Pallas kernel: one (k, NP, D) slab per grid step.
#   x_ref   : (k, NP, D)   — k images of this batch element
#   pe1_ref : (k, 1, D)    — per-image rows of the image table (broadcast over NP)
#   pe2_ref : (NP, D)      — full token table (broadcast over k)
#   out_ref : (k, NP, D)
# ----------------------------------------------------------------------------
def _fpe_kernel(x_ref, pe1_ref, pe2_ref, out_ref):
    out_ref[...] = (
        x_ref[...] + pe1_ref[...] + pe2_ref[...][None, :, :]
    ).astype(out_ref.dtype)


# ----------------------------------------------------------------------------
# Slab-size selection (generation- and core-count-aware).
# ----------------------------------------------------------------------------
def _choose_images_per_block(num_images, num_patches, feature_dim,
                             x_itemsize, pe_itemsize, batch_size,
                             num_cores, vmem_capacity):
    """Largest divisor k of num_images whose double-buffered x+out slabs plus
    resident PE tables fit ~40% of this chip's VMEM, then (on multi-TC parts)
    the largest such k whose total block count is a multiple of the TC count."""
    per_image = num_patches * feature_dim * x_itemsize
    # pe1 double-buffered (tiny) + pe2 resident: count generously.
    table_bytes = (2 * num_images + num_patches) * feature_dim * pe_itemsize
    budget = int(0.40 * vmem_capacity)

    divisors = [k for k in range(1, num_images + 1) if num_images % k == 0]
    fits = [k for k in divisors if 4 * k * per_image + table_bytes <= budget]
    k_best = max(fits) if fits else 1

    if num_cores > 1:
        # Prefer the largest slab that yields a block count divisible by the
        # number of TensorCores (balanced sharding on v7x / megacore parts).
        for k in sorted(divisors, reverse=True):
            if k > k_best:
                continue
            if (batch_size * (num_images // k)) % num_cores == 0:
                return k
    return k_best


# ----------------------------------------------------------------------------
# pallas_call builder (single place for BlockSpecs / grid / compiler params).
# ----------------------------------------------------------------------------
def _build_and_run(x4, pe1, pe2, *, k, batch_major, vmem_limit, cost,
                   single_buffer_token_table):
    B, N, NP, D = x4.shape
    n_img_blocks = N // k
    grid = (B, n_img_blocks) if batch_major else (n_img_blocks, B)

    if batch_major:
        def _bj(g0, g1):
            return g0, g1
    else:
        def _bj(g0, g1):
            return g1, g0

    def x_map(g0, g1):
        b, j = _bj(g0, g1)
        return (b, j, 0, 0)

    def pe1_map(g0, g1):
        _, j = _bj(g0, g1)
        return (j, 0, 0)

    def pe2_map(g0, g1):
        return (0, 0)

    pe2_kwargs = {}
    if single_buffer_token_table:
        # Constant-index, fully-resident table: no need for 2x buffering.
        pe2_kwargs = dict(pipeline_mode=pl.Buffered(1))

    return pl.pallas_call(
        _fpe_kernel,
        out_shape=jax.ShapeDtypeStruct((B, N, NP, D), x4.dtype),
        grid_spec=pltpu.PrefetchScalarGridSpec(
            num_scalar_prefetch=0,
            grid=grid,
            in_specs=[
                # x: one (k, NP, D) slab per grid step; batch dim squeezed.
                pl.BlockSpec((pl.Squeezed(), k, NP, D), x_map),
                # image_pos_table rows for this slab's images: (k, 1, D).
                pl.BlockSpec((k, 1, D), pe1_map),
                # token_pos_table: full table, constant index -> stays resident.
                pl.BlockSpec((NP, D), pe2_map, **pe2_kwargs),
            ],
            out_specs=pl.BlockSpec((pl.Squeezed(), k, NP, D), x_map),
        ),
        compiler_params=pltpu.CompilerParams(
            dimension_semantics=("parallel", "parallel"),
            vmem_limit_bytes=vmem_limit,
        ),
        cost_estimate=cost,
        # Output overwrites x's full extent with same shape/dtype: allow
        # in-place writeback when the caller donates x (free otherwise).
        input_output_aliases={0: 0},
    )(x4, pe1, pe2)


# ----------------------------------------------------------------------------
# Module wrapper.
# ----------------------------------------------------------------------------
class FeaturePositionalEncoding:
    def __init__(self, max_num_images=8, feature_dim=1152, num_patches=256, P=1,
                 cast_tables_to_input_dtype=True):
        self.max_num_images = max_num_images
        self.feature_dim = feature_dim
        self.P = P
        self.num_patches = num_patches // (self.P ** 2)
        self.cast_tables_to_input_dtype = cast_tables_to_input_dtype
        self.image_pos_table = jnp.asarray(
            get_sinusoid_encoding_table(self.max_num_images, self.feature_dim, 10000)
        )  # (max_num_images, feature_dim)
        self.token_pos_table = jnp.asarray(
            get_sinusoid_encoding_table(self.num_patches, self.feature_dim, 70007)
        )  # (num_patches, feature_dim)

    def __call__(self, x):
        batch_size = x.shape[0]
        num_images = x.shape[1]
        D = self.feature_dim
        NP = self.num_patches
        assert num_images <= self.max_num_images, (
            f"num_images={num_images} exceeds max_num_images={self.max_num_images}"
        )

        # Same glue reshape as the torch forward: x is (B, N, ...) with the
        # trailing extent equal to NP * D.
        x = x.reshape(batch_size, num_images, NP, D)
        x_itemsize = jnp.dtype(x.dtype).itemsize

        # PE table dtype: input dtype by default (bandwidth), f32 accumulation
        # if requested; output dtype always matches x.dtype.
        pe_dtype = x.dtype if self.cast_tables_to_input_dtype else jnp.float32
        pe_itemsize = jnp.dtype(pe_dtype).itemsize
        pe1 = self.image_pos_table[:num_images].astype(pe_dtype).reshape(num_images, 1, D)
        pe2 = self.token_pos_table.astype(pe_dtype)

        vmem_capacity = _vmem_capacity_bytes()
        num_cores = _num_tensorcores()
        k = _choose_images_per_block(num_images, NP, D, x_itemsize, pe_itemsize,
                                     batch_size, num_cores, vmem_capacity)
        n_img_blocks = num_images // k

        # Put an even-sized parallel axis outermost so 2-TC sharding is balanced
        # (harmless on single-TC parts).
        batch_major = (batch_size % 2 == 0) or (n_img_blocks % 2 == 1)

        # Scoped-VMEM limit: double-buffered x/out slabs + resident PE tables +
        # headroom, clamped inside physical VMEM for this generation.
        block_bytes = k * NP * D * x_itemsize
        table_bytes = (2 * num_images + NP) * D * pe_itemsize
        vmem_needed = 4 * block_bytes + table_bytes + (4 << 20)
        vmem_limit = int(min(max(vmem_needed, 32 << 20), int(0.85 * vmem_capacity)))

        cost = pl.CostEstimate(
            flops=2 * batch_size * num_images * NP * D,
            transcendentals=0,
            bytes_accessed=(
                2 * batch_size * num_images * NP * D * x_itemsize
                + (num_images + NP) * D * pe_itemsize
            ),
        )

        run = functools.partial(
            _build_and_run, x, pe1, pe2,
            k=k, batch_major=batch_major, vmem_limit=vmem_limit, cost=cost,
        )
        try:
            out4 = run(single_buffer_token_table=True)
        except Exception:
            # Fallback for jax builds that reject pipeline_mode=pl.Buffered(1):
            # default double-buffering of the (small) token table.
            out4 = run(single_buffer_token_table=False)

        # Final reshape is a free merge of contiguous dims.
        return out4.reshape(batch_size, num_images * NP, D)


# ----------------------------------------------------------------------------
# Reference (pure JAX) for verification.
# ----------------------------------------------------------------------------
def fpe_reference(x, image_tab, token_tab, num_patches, feature_dim):
    B, N = x.shape[0], x.shape[1]
    x = x.reshape(B, N, num_patches, feature_dim)
    pe1 = image_tab[:N].reshape(1, N, 1, feature_dim)
    pe2 = token_tab.reshape(1, 1, num_patches, feature_dim)
    x_pe = x + pe1 + pe2
    return x_pe.reshape(B, N * num_patches, feature_dim)


if __name__ == "__main__":
    # Small shapes consistent with the module:
    #   batch=2, num_images=4 (<= max_num_images=8),
    #   num_patches=16, feature_dim=128, P=1.
    B, N, NP, D = 2, 4, 16, 128

    module = FeaturePositionalEncoding(
        max_num_images=8, feature_dim=D, num_patches=NP, P=1
    )

    key = jax.random.PRNGKey(0)
    k1, k2 = jax.random.split(key)
    x = jax.random.normal(k1, (B, N, NP, D), dtype=jnp.float32)

    # Compute the reference BEFORE the kernel call (the kernel aliases its input).
    ref = jax.block_until_ready(
        fpe_reference(x, module.image_pos_table, module.token_pos_table, NP, D)
    )

    out = jax.block_until_ready(module(x))
    assert out.shape == (B, N * NP, D), out.shape
    np.testing.assert_allclose(np.asarray(out), np.asarray(ref), rtol=1e-6, atol=1e-6)

    # Second case: single batch element with the full image count — exercises
    # the multi-core block-count balancing path and the pe1 table slice.
    B2, N2 = 1, 8
    x2 = jax.random.normal(k2, (B2, N2, NP, D), dtype=jnp.float32)
    ref2 = jax.block_until_ready(
        fpe_reference(x2, module.image_pos_table, module.token_pos_table, NP, D)
    )
    out2 = jax.block_until_ready(module(x2))
    assert out2.shape == (B2, N2 * NP, D), out2.shape
    np.testing.assert_allclose(np.asarray(out2), np.asarray(ref2), rtol=1e-6, atol=1e-6)

    print("KERNEL_OK")
</pallas_src>

<mosaic_0001>
module attributes {stable_mosaic.version = 11 : i64} {
  func.func @_fpe_kernel(%arg0: i32, %arg1: i32, %arg2: memref<1x4x16x128xf32, #tpu.memory_space<vmem>>, %arg3: memref<4x1x128xf32, #tpu.memory_space<vmem>>, %arg4: memref<16x128xf32, #tpu.memory_space<vmem>>, %arg5: memref<1x4x16x128xf32, #tpu.memory_space<vmem>>) attributes {dimension_semantics = [#tpu.dimension_semantics<parallel>, #tpu.dimension_semantics<parallel>], iteration_bounds = array<i64: 2, 1>, scalar_prefetch = 0 : i64, scratch_operands = 0 : i64, tpu.core_type = #tpu.core_type<tc>, window_params = [{transform_indices = @transform_0, window_bounds = array<i64: 1, 4, 16, 128>}, {transform_indices = @transform_1, window_bounds = array<i64: 4, 1, 128>}, {pipeline_mode = #tpu.pipeline_mode<synchronous>, transform_indices = @transform_2, window_bounds = array<i64: 16, 128>}, {transform_indices = @transform_3, window_bounds = array<i64: 1, 4, 16, 128>}]} {
    %c0 = arith.constant 0 : index
    %c0_0 = arith.constant 0 : index
    %c0_1 = arith.constant 0 : index
    %c0_2 = arith.constant 0 : index
    %0 = vector.load %arg2[%c0, %c0_0, %c0_1, %c0_2] : memref<1x4x16x128xf32, #tpu.memory_space<vmem>>, vector<1x4x16x128xf32>
    %1 = vector.shape_cast %0 : vector<1x4x16x128xf32> to vector<4x16x128xf32>
    %c0_3 = arith.constant 0 : index
    %c0_4 = arith.constant 0 : index
    %c0_5 = arith.constant 0 : index
    %2 = vector.load %arg3[%c0_3, %c0_4, %c0_5] : memref<4x1x128xf32, #tpu.memory_space<vmem>>, vector<4x1x128xf32>
    %3 = vector.broadcast %2 : vector<4x1x128xf32> to vector<4x16x128xf32>
    %4 = arith.addf %1, %3 : vector<4x16x128xf32>
    %c0_6 = arith.constant 0 : index
    %c0_7 = arith.constant 0 : index
    %5 = vector.load %arg4[%c0_6, %c0_7] : memref<16x128xf32, #tpu.memory_space<vmem>>, vector<16x128xf32>
    %6 = vector.shape_cast %5 : vector<16x128xf32> to vector<1x16x128xf32>
    %7 = vector.broadcast %6 : vector<1x16x128xf32> to vector<4x16x128xf32>
    %8 = arith.addf %4, %7 : vector<4x16x128xf32>
    %c0_8 = arith.constant 0 : index
    %c0_9 = arith.constant 0 : index
    %c0_10 = arith.constant 0 : index
    %c0_11 = arith.constant 0 : index
    %9 = vector.load %arg5[%c0_8, %c0_9, %c0_10, %c0_11] : memref<1x4x16x128xf32, #tpu.memory_space<vmem>>, vector<1x4x16x128xf32>
    %10 = vector.shape_cast %9 : vector<1x4x16x128xf32> to vector<4x16x128xf32>
    %11 = vector.shape_cast %8 : vector<4x16x128xf32> to vector<1x4x16x128xf32>
    tpu.vector_store %arg5[%c0_8, %c0_9, %c0_10, %c0_11], %11 {strides = array<i32>} : memref<1x4x16x128xf32, #tpu.memory_space<vmem>>, vector<1x4x16x128xf32>,
    return
  }
  func.func @transform_0(%arg0: i32, %arg1: i32) -> (i32, i32, i32, i32) {
    %c0_i32 = arith.constant 0 : i32
    %c0_i32_0 = arith.constant 0 : i32
    %c0_i32_1 = arith.constant 0 : i32
    return %arg0, %arg1, %c0_i32, %c0_i32_0 : i32, i32, i32, i32
  }
  func.func @transform_1(%arg0: i32, %arg1: i32) -> (i32, i32, i32) {
    %c0_i32 = arith.constant 0 : i32
    %c0_i32_0 = arith.constant 0 : i32
    %c0_i32_1 = arith.constant 0 : i32
    return %arg1, %c0_i32, %c0_i32_0 : i32, i32, i32
  }
  func.func @transform_2(%arg0: i32, %arg1: i32) -> (i32, i32) {
    %c0_i32 = arith.constant 0 : i32
    %c0_i32_0 = arith.constant 0 : i32
    %c0_i32_1 = arith.constant 0 : i32
    return %c0_i32, %c0_i32_0 : i32, i32
  }
  func.func @transform_3(%arg0: i32, %arg1: i32) -> (i32, i32, i32, i32) {
    %c0_i32 = arith.constant 0 : i32
    %c0_i32_0 = arith.constant 0 : i32
    %c0_i32_1 = arith.constant 0 : i32
    return %arg0, %arg1, %c0_i32, %c0_i32_0 : i32, i32, i32, i32
  }
}

module attributes {stable_mosaic.version = 11 : i64} {
  func.func @_fpe_kernel(%arg0: i32, %arg1: i32, %arg2: memref<1x4x16x128xf32, #tpu.memory_space<vmem>>, %arg3: memref<4x1x128xf32, #tpu.memory_space<vmem>>, %arg4: memref<16x128xf32, #tpu.memory_space<vmem>>, %arg5: memref<1x4x16x128xf32, #tpu.memory_space<vmem>>) attributes {dimension_semantics = [#tpu.dimension_semantics<parallel>, #tpu.dimension_semantics<parallel>], iteration_bounds = array<i64: 2, 1>, scalar_prefetch = 0 : i64, scratch_operands = 0 : i64, tpu.core_type = #tpu.core_type<tc>, window_params = [{transform_indices = @transform_0, window_bounds = array<i64: 1, 4, 16, 128>}, {transform_indices = @transform_1, window_bounds = array<i64: 4, 1, 128>}, {pipeline_mode = #tpu.pipeline_mode<synchronous>, transform_indices = @transform_2, window_bounds = array<i64: 16, 128>}, {transform_indices = @transform_3, window_bounds = array<i64: 1, 4, 16, 128>}]} {
    %c0 = arith.constant 0 : index
    %c0_0 = arith.constant 0 : index
    %c0_1 = arith.constant 0 : index
    %c0_2 = arith.constant 0 : index
    %0 = vector.load %arg2[%c0, %c0_0, %c0_1, %c0_2] : memref<1x4x16x128xf32, #tpu.memory_space<vmem>>, vector<1x4x16x128xf32>
    %1 = vector.shape_cast %0 : vector<1x4x16x128xf32> to vector<4x16x128xf32>
    %c0_3 = arith.constant 0 : index
    %c0_4 = arith.constant 0 : index
    %c0_5 = arith.constant 0 : index
    %2 = vector.load %arg3[%c0_3, %c0_4, %c0_5] : memref<4x1x128xf32, #tpu.memory_space<vmem>>, vector<4x1x128xf32>
    %3 = vector.broadcast %2 : vector<4x1x128xf32> to vector<4x16x128xf32>
    %4 = arith.addf %1, %3 : vector<4x16x128xf32>
    %c0_6 = arith.constant 0 : index
    %c0_7 = arith.constant 0 : index
    %5 = vector.load %arg4[%c0_6, %c0_7] : memref<16x128xf32, #tpu.memory_space<vmem>>, vector<16x128xf32>
    %6 = vector.shape_cast %5 : vector<16x128xf32> to vector<1x16x128xf32>
    %7 = vector.broadcast %6 : vector<1x16x128xf32> to vector<4x16x128xf32>
    %8 = arith.addf %4, %7 : vector<4x16x128xf32>
    %c0_8 = arith.constant 0 : index
    %c0_9 = arith.constant 0 : index
    %c0_10 = arith.constant 0 : index
    %c0_11 = arith.constant 0 : index
    %9 = vector.load %arg5[%c0_8, %c0_9, %c0_10, %c0_11] : memref<1x4x16x128xf32, #tpu.memory_space<vmem>>, vector<1x4x16x128xf32>
    %10 = vector.shape_cast %9 : vector<1x4x16x128xf32> to vector<4x16x128xf32>
    %11 = vector.shape_cast %8 : vector<4x16x128xf32> to vector<1x4x16x128xf32>
    tpu.vector_store %arg5[%c0_8, %c0_9, %c0_10, %c0_11], %11 {strides = array<i32>} : memref<1x4x16x128xf32, #tpu.memory_space<vmem>>, vector<1x4x16x128xf32>,
    return
  }
  func.func @transform_0(%arg0: i32, %arg1: i32) -> (i32, i32, i32, i32) {
    %c0_i32 = arith.constant 0 : i32
    %c0_i32_0 = arith.constant 0 : i32
    %c0_i32_1 = arith.constant 0 : i32
    return %arg0, %arg1, %c0_i32, %c0_i32_0 : i32, i32, i32, i32
  }
  func.func @transform_1(%arg0: i32, %arg1: i32) -> (i32, i32, i32) {
    %c0_i32 = arith.constant 0 : i32
    %c0_i32_0 = arith.constant 0 : i32
    %c0_i32_1 = arith.constant 0 : i32
    return %arg1, %c0_i32, %c0_i32_0 : i32, i32, i32
  }
  func.func @transform_2(%arg0: i32, %arg1: i32) -> (i32, i32) {
    %c0_i32 = arith.constant 0 : i32
    %c0_i32_0 = arith.constant 0 : i32
    %c0_i32_1 = arith.constant 0 : i32
    return %c0_i32, %c0_i32_0 : i32, i32
  }
  func.func @transform_3(%arg0: i32, %arg1: i32) -> (i32, i32, i32, i32) {
    %c0_i32 = arith.constant 0 : i32
    %c0_i32_0 = arith.constant 0 : i32
    %c0_i32_1 = arith.constant 0 : i32
    return %arg0, %arg1, %c0_i32, %c0_i32_0 : i32, i32, i32, i32
  }
}

</mosaic_0001>

<bundles_post_ra>
// kernel: tpu_custom_call.1
= control target key start
LH: loop header
LB: loop body
LE: loop exit
PB: predicated region body
PF: predicated region fallthrough
CT: control target
= control target key end

     0   :  { %8 = vsyncpa [#allocation3], 0  ;;  %s828_s0 = inlined_call_operand.hbm [shape: f32[2,4,16,128], index: 0, kind: input, shape index: {}, may-alias: {0,3}]   ;;  %s829_s1 = inlined_call_operand.vmem [shape: f32[4,1,128], index: 1, kind: input, shape index: {}]   ;;  %s830_s2 = inlined_call_operand.vmem [shape: f32[16,128], index: 2, kind: input, shape index: {}]   ;;  %s831_s3 = inlined_call_operand.hbm [shape: f32[2,4,16,128], index: 3, kind: output, shape index: {}, may-alias: {0,3}]  }
   0x1   :  { %10 = vsyncpa [#allocation3 + $0x1], 0 }
   0x2   :  { %11 = vsyncpa [#allocation4], 0 }
   0x3   :  { %13 = vsyncpa [#allocation4 + $0x1], 0  ;;  %s635_s12 = smov 0   ;;  %s637_s13 = smov 0  }
   0x4   :  { %s639_s14 = smov 0   ;;  %s641_s15 = smov 0  }
   0x5   :  { %s643_s16 = smov 0   ;;  %s645_s17 = smov 0  }
   0x6 LB: > { %s407_s18 = sadd.s32 4294967295, %s607_s17   ;;  %s408_s19 = sadd.s32 4294967294, %s607_s17   ;;  %s607_s17 = sphi %s645_s17, %s19_s17   ;;  %s603_s16 = sphi %s643_s16, %s846_s16   ;;  %s599_s15 = sphi %s641_s15, %s845_s15   ;;  %s595_s14 = sphi %s639_s14, %s844_s14   ;;  %s591_s13 = sphi %s637_s13, %s843_s13   ;;  %s587_s12 = sphi %s635_s12, %s842_s12  }
   0x7   : > { %s31_s20 = sadd.s32 1, %s603_s16  ;;  %s40_s21 = sadd.s32 1, %s595_s14 }
   0x8   : > { %p33_p0 = scmp.ge.s32.totalorder %s31_s20, 2  ;;  %p47_p1 = scmp.ne.s32.totalorder %s595_s14, %s591_s13 }
   0x9   : > { %p48_p2 = scmp.eq.s32.totalorder %s607_s17, 0  ;;  %p53_p3 = scmp.ne.s32.totalorder %s591_s13, %s587_s12 }
   0xa   : > { %s848_s20 = smov (%p33_p0, %s31_s20), 0  ;;  %p54_p5 = scmp.eq.s32.totalorder %s407_s18, 0 }
   0xb   : > { %p676_p4 = por %p48_p2, %p47_p1  ;;  %s35_s23 = ssub.s32 %s603_s16, %s848_s20 }
   0xc   : > { %p126_p6 = scmp.eq.s32.totalorder %s407_s18, 1  ;;  %p38_p7 = scmp.eq.s32.totalorder %s35_s23, 0 }
   0xd   : > { %p682_p8 = por %p54_p5, %p53_p3  ;;  %p132_p10 = scmp.eq.s32.totalorder %s408_s19, 1 }
   0xe   : > { %p686_p9 = por %p126_p6, %p47_p1  ;;  %p441_p13 = scmp.lt.s32.totalorder %s607_s17, 2 }
   0xf   : > { %s691_s26 = scalar_select %p38_p7, %s595_s14, %s40_s21  }
  0x10   : > { %s835_s25 = scalar_select %p686_p9, 1, 0 }
  0x11   : > { %p693_p11 = por %p132_p10, %p53_p3  ;;  %s163_s28 = sand.u32 1, %s595_s14  }
  0x12   : > { %s412_s29 = sshll.u32 %s163_s28, 6  ;;  %s427_s30 = sshll.u32 %s603_s16, 10 }
  0x13   : > { %s836_s27 = scalar_select %p693_p11, 1, 0 }
  0x14   : > { %s704_s6 = scalar_lea.hbm %s828_s0, %s427_s30  ;;  %s167_s7 = scalar_lea.vmem [#allocation2], %s412_s29 }
  0x15   : > { %s177_s8 = sshll.u32 %s167_s7, 4  ;;  %p710_p0 = pnand %p441_p13, %p676_p4  ;;  %s706_s8 = int_to_ptr.vmem [resolvable:$true] %s177_s8 }
  0x16   : > { %s715_s10 = scalar_lea.sflag [#allocation3], %s163_s28  ;;  %s495_s11 = scalar_lea.hbm %s704_s6, 1024 }
  0x17   : > { %p496_p2 = scmp.ne.s32.totalorder %s704_s6, %s495_s11  ;;  %p497_p3 = pneg %p710_p0 }
  0x18   : > { %s500_s21 = scalar_lea.hbm %s828_s0, 2048  ;;  %p501_p4 = scmp.lt.u32.totalorder %s704_s6, %s828_s0 }
  0x19   : > { %p498_p5 = pnand %p497_p3, %p496_p2  ;;  %p502_p7 = scmp.lt.u32.totalorder %s500_s21, %s495_s11 }
  0x1a   : > { %p504_p13 = scmp.lt.u32.totalorder %s495_s11, %s704_s6 }
  0x1b   : > { %p499_p6 = pneg %p498_p5  ;;  %p503_p10 = por %p502_p7, %p501_p4 }
  0x1d   : > { %p505_p12 = por %p504_p13, %p503_p10 }
  0x1f   : > { %p506_p1 = pnand %p505_p12, %p499_p6 }
  0x21   : > { %509 = shalt.err (!%p506_p1)
}
  0x22   : > { %s510_s28 = scalar_lea.vmem %s706_s8, 1024  ;;  %s609_s29 = smov [#allocation2]  }
  0x23   : > { %p511_p2 = scmp.ne.s32.totalorder %s706_s8, %s510_s28  ;;  %s515_s30 = sshll.u32 %s609_s29, 4  ;;  %s516_s30 = int_to_ptr.vmem [resolvable:$false] %s515_s30 }
  0x24   : > { %s517_s4 = scalar_lea.vmem %s516_s30, 2048  ;;  %p518_p9 = scmp.lt.s32.totalorder %s706_s8, %s516_s30 }
  0x25   : > { %p513_p5 = pnand %p511_p2, %p497_p3  ;;  %p519_p4 = scmp.lt.s32.totalorder %s517_s4, %s510_s28 }
  0x27   : > { %p514_p11 = pneg %p513_p5  ;;  %p520_p7 = por %p519_p4, %p518_p9 }
  0x29   : > { %p521_p10 = pnand %p520_p7, %p514_p11 }
  0x2b   : > { %524 = shalt.err (!%p521_p10)
}
  0x2c   : > { %s610_s5 = smov 128   ;;  %s611_s7 = smov 8  }
  0x2d   : > { %436 = dma.hbm_to_vmem [thread:$0]  (!%p710_p0), %s704_s6, 1024, %s706_s8, %s715_s10, %s610_s5, %s610_s5, %s611_s7  }
  0x2e   : > { %p185_p12 = scmp.lt.s32.totalorder %s607_s17, 3  ;;  %p838_p1 = scmp.ge.s32.totalorder %s607_s17, 1 }
  0x30   : > { %p186_p3 = pnand %p838_p1, %p185_p12 }
  0x31   : > { %s747_s11 = sand.u32 (!%p186_p3), 1, %s591_s13  }
  0x32   : > { %189 = sbr.rel (%p186_p3) target bundleno = 84 (0x54), region = 32  ;;  %s416_s18 = sshll.u32 (!%p186_p3), %s747_s11, 6 }
  0x33   : > { %s192_s19 = scalar_lea.sflag (!%p186_p3), [#allocation3], %s747_s11  ;;  %s195_s21 = scalar_lea.vmem (!%p186_p3), [#allocation2], %s416_s18 }
  0x39   : > { %578 = dma.done.wait (%p682_p8), %s192_s19, 1024  }
  0x3a   : > { %580 = vsyncadd (%p682_p8), %s192_s19, 4294966272  ;;  %v229_v0 = vld [vmem:[%s195_s21] sm:$0xff]  ;;  %v230_v4 = vld [vmem:[%s195_s21 + $0x8] sm:$0xff]  ;;  %s221_s29 = scalar_lea.vmem [#allocation5], %s416_s18  ;;  %s428_s7 = sshll.u32 %s599_s15, 10 }
  0x3b   : > { %v418_v1 = vld [vmem:[%s829_s1] ss:$0 sm:$0xff]  ;;  %v274_v5 = vld [vmem:[%s830_s2 + $0x8] sm:$0xff]  ;;  %v231_v6 = vld [vmem:[%s195_s21 + $0x10] sm:$0xff]  ;;  %s308_s30 = sshll.u32 %s221_s29, 4  ;;  %s779_s8 = scalar_lea.hbm %s831_s3, %s428_s7  ;;  %s774_s30 = int_to_ptr.vmem [resolvable:$true] %s308_s30 }
  0x3c   : > { %v273_v2 = vld [vmem:[%s830_s2] sm:$0xff]  ;;  %v265_v3 = vadd.f32 %v418_v1, %v229_v0  ;;  %v266_v7 = vadd.f32 %v418_v1, %v230_v4  ;;  %v232_v9 = vld [vmem:[%s195_s21 + $0x18] sm:$0xff]  ;;  %v234_v15 = vld [vmem:[%s195_s21 + $0x28] sm:$0xff]  ;;  %s525_s9 = scalar_lea.vmem %s774_s30, 1024  ;;  %p839_p9 = scmp.ne.s32.totalorder %s835_s25, 0 }
  0x3d   : > { %v419_v8 = vld [vmem:[%s829_s1 + $0x1] ss:$0 sm:$0xff]  ;;  %v420_v14 = vld [vmem:[%s829_s1 + $0x2] ss:$0 sm:$0xff]  ;;  %v235_v16 = vld [vmem:[%s195_s21 + $0x30] sm:$0xff]  ;;  %p526_p8 = scmp.ne.s32.totalorder %s774_s30, %s525_s9  ;;  %s612_s10 = smov [#allocation5]  }
  0x3e   : > { %v233_v10 = vld [vmem:[%s195_s21 + $0x20] sm:$0xff]  ;;  %v275_v11 = vadd.f32 %v273_v2, %v265_v3  ;;  %v267_v12 = vadd.f32 %v419_v8, %v231_v6  ;;  %v268_v13 = vadd.f32 %v419_v8, %v232_v9  ;;  %v276_v17 = vadd.f32 %v274_v5, %v266_v7  ;;  %v236_v21 = vld [vmem:[%s195_s21 + $0x38] sm:$0xff]  ;;  %s292_s21 = scalar_lea.sflag [#allocation4], %s747_s11  ;;  %s529_s22 = sshll.u32 %s612_s10, 4  ;;  %s530_s22 = int_to_ptr.vmem [resolvable:$false] %s529_s22 }
  0x3f   : > { %v269_v18 = vadd.f32 %v420_v14, %v233_v10  ;;  %v270_v19 = vadd.f32 %v420_v14, %v234_v15  ;;  %v421_v20 = vld [vmem:[%s829_s1 + $0x3] ss:$0 sm:$0xff]  ;;  %p527_p11 = pnand %p526_p8, %p839_p9  ;;  %s531_s23 = scalar_lea.vmem %s530_s22, 2048 }
  0x40   : > { %283 = vst [vmem:[%s221_s29] sm:$0xff] %v275_v11  ;;  %v277_v22 = vadd.f32 %v273_v2, %v267_v12  ;;  %v278_v23 = vadd.f32 %v274_v5, %v268_v13  ;;  %v271_v24 = vadd.f32 %v421_v20, %v235_v16  ;;  %v272_v25 = vadd.f32 %v421_v20, %v236_v21  ;;  %p532_p6 = scmp.lt.s32.totalorder %s774_s30, %s530_s22  ;;  %p533_p13 = scmp.lt.s32.totalorder %s531_s23, %s525_s9 }
  0x41   : > { %284 = vst [vmem:[%s221_s29 + $0x8] sm:$0xff] %v276_v17  ;;  %v279_v26 = vadd.f32 %v273_v2, %v269_v18  ;;  %v280_v27 = vadd.f32 %v274_v5, %v270_v19  ;;  %p528_p0 = pneg %p527_p11 }
  0x42   : > { %285 = vst [vmem:[%s221_s29 + $0x10] sm:$0xff] %v277_v22  ;;  %286 = vst [vmem:[%s221_s29 + $0x18] sm:$0xff] %v278_v23  ;;  %v281_v28 = vadd.f32 %v273_v2, %v271_v24  ;;  %v282_v29 = vadd.f32 %v274_v5, %v272_v25  ;;  %p534_p2 = por %p533_p13, %p532_p6 }
  0x43   : > { %287 = vst [vmem:[%s221_s29 + $0x20] sm:$0xff] %v279_v26  ;;  %288 = vst [vmem:[%s221_s29 + $0x28] sm:$0xff] %v280_v27 }
  0x44   : > { %289 = vst [vmem:[%s221_s29 + $0x30] sm:$0xff] %v281_v28  ;;  %290 = vst [vmem:[%s221_s29 + $0x38] sm:$0xff] %v282_v29  ;;  %p535_p5 = pnand %p534_p2, %p528_p0 }
  0x46   : > { %538 = shalt.err (!%p535_p5)
}
  0x47   : > { %s539_s24 = scalar_lea.hbm %s779_s8, 1024  ;;  %s543_s4 = scalar_lea.hbm %s831_s3, 2048 }
  0x48   : > { %p540_p4 = scmp.ne.s32.totalorder %s779_s8, %s539_s24  ;;  %p544_p12 = scmp.lt.u32.totalorder %s779_s8, %s831_s3 }
  0x49   : > { %p545_p1 = scmp.lt.u32.totalorder %s543_s4, %s539_s24  ;;  %p547_p8 = scmp.lt.u32.totalorder %s539_s24, %s779_s8 }
  0x4a   : > { %p541_p7 = pnand %p540_p4, %p839_p9 }
  0x4b   : > { %p546_p3 = por %p545_p1, %p544_p12 }
  0x4c   : > { %p542_p10 = pneg %p541_p7 }
  0x4d   : > { %p548_p11 = por %p547_p8, %p546_p3 }
  0x4f   : > { %p549_p0 = pnand %p548_p11, %p542_p10 }
  0x51   : > { %552 = shalt.err (!%p549_p0)
}
  0x52   : > { %s613_s19 = smov 128   ;;  %s614_s6 = smov 8  }
  0x53   : > { %431 = dma.vmem_to_hbm [thread:$0]  (%p839_p9), %s774_s30, 1024, %s779_s8, %s292_s21, %s613_s19, %s613_s19, %s614_s6  }
  0x54 PF: > { %s323_s15 = sand.u32 1, %s587_s12   ;;  %p840_p6 = scmp.ne.s32.totalorder %s836_s27, 0 }
  0x55   : > { %p841_p13 = scmp.ge.s32.totalorder %s607_s17, 2  ;;  %s324_s18 = scalar_lea.sflag [#allocation4], %s323_s15 }
  0x57   : > { %p438_p2 = pnand %p841_p13, %p840_p6 }
  0x59   : > { %582 = dma.done.wait (!%p438_p2), %s324_s18, 1024  }
  0x5a   : > { %584 = vsyncadd (!%p438_p2), %s324_s18, 4294966272  ;;  %s19_s17 = sadd.s32 1, %s607_s17   ;;  %s842_s12 = smov %s591_s13 }
  0x5b   : > { %p16_p5 = scmp.ge.s32.totalorder %s19_s17, 4   ;;  %s843_s13 = smov %s595_s14 }
  0x5c   : > { %s844_s14 = smov %s691_s26  ;;  %s845_s15 = smov %s603_s16 }
  0x5d   : > { %s846_s16 = smov %s848_s20  ;;  %18 = sbr.rel (!%p16_p5) target bundleno = 6 (0x6), region = 80 }
  0x64   :  { %329 = vsyncpa [#allocation3], 1 }
  0x65   :  { %331 = vsyncpa [#allocation3 + $0x1], 1 }
  0x66   :  { %332 = vsyncpa [#allocation4], 1 }
  0x67   :  { %334 = vsyncpa [#allocation4 + $0x1], 1 }

// kernel: tpu_custom_call.1
= control target key start
LH: loop header
LB: loop body
LE: loop exit
PB: predicated region body
PF: predicated region fallthrough
CT: control target
= control target key end

     0   :  { %8 = vsyncpa [#allocation3], 0  ;;  %s828_s0 = inlined_call_operand.hbm [shape: f32[2,4,16,128], index: 0, kind: input, shape index: {}, may-alias: {0,3}]   ;;  %s829_s1 = inlined_call_operand.vmem [shape: f32[4,1,128], index: 1, kind: input, shape index: {}]   ;;  %s830_s2 = inlined_call_operand.vmem [shape: f32[16,128], index: 2, kind: input, shape index: {}]   ;;  %s831_s3 = inlined_call_operand.hbm [shape: f32[2,4,16,128], index: 3, kind: output, shape index: {}, may-alias: {0,3}]  }
   0x1   :  { %10 = vsyncpa [#allocation3 + $0x1], 0 }
   0x2   :  { %11 = vsyncpa [#allocation4], 0 }
   0x3   :  { %13 = vsyncpa [#allocation4 + $0x1], 0  ;;  %s635_s12 = smov 0   ;;  %s637_s13 = smov 0  }
   0x4   :  { %s639_s14 = smov 0   ;;  %s641_s15 = smov 0  }
   0x5   :  { %s643_s16 = smov 0   ;;  %s645_s17 = smov 0  }
   0x6 LB: > { %s407_s18 = sadd.s32 4294967295, %s607_s17   ;;  %s408_s19 = sadd.s32 4294967294, %s607_s17   ;;  %s607_s17 = sphi %s645_s17, %s19_s17   ;;  %s603_s16 = sphi %s643_s16, %s846_s16   ;;  %s599_s15 = sphi %s641_s15, %s845_s15   ;;  %s595_s14 = sphi %s639_s14, %s844_s14   ;;  %s591_s13 = sphi %s637_s13, %s843_s13   ;;  %s587_s12 = sphi %s635_s12, %s842_s12  }
   0x7   : > { %s31_s20 = sadd.s32 1, %s603_s16  ;;  %s40_s21 = sadd.s32 1, %s595_s14 }
   0x8   : > { %p33_p0 = scmp.ge.s32.totalorder %s31_s20, 2  ;;  %p47_p1 = scmp.ne.s32.totalorder %s595_s14, %s591_s13 }
   0x9   : > { %p48_p2 = scmp.eq.s32.totalorder %s607_s17, 0  ;;  %p53_p3 = scmp.ne.s32.totalorder %s591_s13, %s587_s12 }
   0xa   : > { %s848_s20 = smov (%p33_p0, %s31_s20), 0  ;;  %p54_p5 = scmp.eq.s32.totalorder %s407_s18, 0 }
   0xb   : > { %p676_p4 = por %p48_p2, %p47_p1  ;;  %s35_s23 = ssub.s32 %s603_s16, %s848_s20 }
   0xc   : > { %p126_p6 = scmp.eq.s32.totalorder %s407_s18, 1  ;;  %p38_p7 = scmp.eq.s32.totalorder %s35_s23, 0 }
   0xd   : > { %p682_p8 = por %p54_p5, %p53_p3  ;;  %p132_p10 = scmp.eq.s32.totalorder %s408_s19, 1 }
   0xe   : > { %p686_p9 = por %p126_p6, %p47_p1  ;;  %p441_p13 = scmp.lt.s32.totalorder %s607_s17, 2 }
   0xf   : > { %s691_s26 = scalar_select %p38_p7, %s595_s14, %s40_s21  }
  0x10   : > { %s835_s25 = scalar_select %p686_p9, 1, 0 }
  0x11   : > { %p693_p11 = por %p132_p10, %p53_p3  ;;  %s163_s28 = sand.u32 1, %s595_s14  }
  0x12   : > { %s412_s29 = sshll.u32 %s163_s28, 6  ;;  %s427_s30 = sshll.u32 %s603_s16, 10 }
  0x13   : > { %s836_s27 = scalar_select %p693_p11, 1, 0 }
  0x14   : > { %s704_s6 = scalar_lea.hbm %s828_s0, %s427_s30  ;;  %s167_s7 = scalar_lea.vmem [#allocation2], %s412_s29 }
  0x15   : > { %s177_s8 = sshll.u32 %s167_s7, 4  ;;  %p710_p0 = pnand %p441_p13, %p676_p4  ;;  %s706_s8 = int_to_ptr.vmem [resolvable:$true] %s177_s8 }
  0x16   : > { %s715_s10 = scalar_lea.sflag [#allocation3], %s163_s28  ;;  %s495_s11 = scalar_lea.hbm %s704_s6, 1024 }
  0x17   : > { %p496_p2 = scmp.ne.s32.totalorder %s704_s6, %s495_s11  ;;  %p497_p3 = pneg %p710_p0 }
  0x18   : > { %s500_s21 = scalar_lea.hbm %s828_s0, 2048  ;;  %p501_p4 = scmp.lt.u32.totalorder %s704_s6, %s828_s0 }
  0x19   : > { %p498_p5 = pnand %p497_p3, %p496_p2  ;;  %p502_p7 = scmp.lt.u32.totalorder %s500_s21, %s495_s11 }
  0x1a   : > { %p504_p13 = scmp.lt.u32.totalorder %s495_s11, %s704_s6 }
  0x1b   : > { %p499_p6 = pneg %p498_p5  ;;  %p503_p10 = por %p502_p7, %p501_p4 }
  0x1d   : > { %p505_p12 = por %p504_p13, %p503_p10 }
  0x1f   : > { %p506_p1 = pnand %p505_p12, %p499_p6 }
  0x21   : > { %509 = shalt.err (!%p506_p1)
}
  0x22   : > { %s510_s28 = scalar_lea.vmem %s706_s8, 1024  ;;  %s609_s29 = smov [#allocation2]  }
  0x23   : > { %p511_p2 = scmp.ne.s32.totalorder %s706_s8, %s510_s28  ;;  %s515_s30 = sshll.u32 %s609_s29, 4  ;;  %s516_s30 = int_to_ptr.vmem [resolvable:$false] %s515_s30 }
  0x24   : > { %s517_s4 = scalar_lea.vmem %s516_s30, 2048  ;;  %p518_p9 = scmp.lt.s32.totalorder %s706_s8, %s516_s30 }
  0x25   : > { %p513_p5 = pnand %p511_p2, %p497_p3  ;;  %p519_p4 = scmp.lt.s32.totalorder %s517_s4, %s510_s28 }
  0x27   : > { %p514_p11 = pneg %p513_p5  ;;  %p520_p7 = por %p519_p4, %p518_p9 }
  0x29   : > { %p521_p10 = pnand %p520_p7, %p514_p11 }
  0x2b   : > { %524 = shalt.err (!%p521_p10)
}
  0x2c   : > { %s610_s5 = smov 128   ;;  %s611_s7 = smov 8  }
  0x2d   : > { %436 = dma.hbm_to_vmem [thread:$0]  (!%p710_p0), %s704_s6, 1024, %s706_s8, %s715_s10, %s610_s5, %s610_s5, %s611_s7  }
  0x2e   : > { %p185_p12 = scmp.lt.s32.totalorder %s607_s17, 3  ;;  %p838_p1 = scmp.ge.s32.totalorder %s607_s17, 1 }
  0x30   : > { %p186_p3 = pnand %p838_p1, %p185_p12 }
  0x31   : > { %s747_s11 = sand.u32 (!%p186_p3), 1, %s591_s13  }
  0x32   : > { %189 = sbr.rel (%p186_p3) target bundleno = 84 (0x54), region = 32  ;;  %s416_s18 = sshll.u32 (!%p186_p3), %s747_s11, 6 }
  0x33   : > { %s192_s19 = scalar_lea.sflag (!%p186_p3), [#allocation3], %s747_s11  ;;  %s195_s21 = scalar_lea.vmem (!%p186_p3), [#allocation2], %s416_s18 }
  0x39   : > { %578 = dma.done.wait (%p682_p8), %s192_s19, 1024  }
  0x3a   : > { %580 = vsyncadd (%p682_p8), %s192_s19, 4294966272  ;;  %v229_v0 = vld [vmem:[%s195_s21] sm:$0xff]  ;;  %v230_v4 = vld [vmem:[%s195_s21 + $0x8] sm:$0xff]  ;;  %s221_s29 = scalar_lea.vmem [#allocation5], %s416_s18  ;;  %s428_s7 = sshll.u32 %s599_s15, 10 }
  0x3b   : > { %v418_v1 = vld [vmem:[%s829_s1] ss:$0 sm:$0xff]  ;;  %v274_v5 = vld [vmem:[%s830_s2 + $0x8] sm:$0xff]  ;;  %v231_v6 = vld [vmem:[%s195_s21 + $0x10] sm:$0xff]  ;;  %s308_s30 = sshll.u32 %s221_s29, 4  ;;  %s779_s8 = scalar_lea.hbm %s831_s3, %s428_s7  ;;  %s774_s30 = int_to_ptr.vmem [resolvable:$true] %s308_s30 }
  0x3c   : > { %v273_v2 = vld [vmem:[%s830_s2] sm:$0xff]  ;;  %v265_v3 = vadd.f32 %v418_v1, %v229_v0  ;;  %v266_v7 = vadd.f32 %v418_v1, %v230_v4  ;;  %v232_v9 = vld [vmem:[%s195_s21 + $0x18] sm:$0xff]  ;;  %v234_v15 = vld [vmem:[%s195_s21 + $0x28] sm:$0xff]  ;;  %s525_s9 = scalar_lea.vmem %s774_s30, 1024  ;;  %p839_p9 = scmp.ne.s32.totalorder %s835_s25, 0 }
  0x3d   : > { %v419_v8 = vld [vmem:[%s829_s1 + $0x1] ss:$0 sm:$0xff]  ;;  %v420_v14 = vld [vmem:[%s829_s1 + $0x2] ss:$0 sm:$0xff]  ;;  %v235_v16 = vld [vmem:[%s195_s21 + $0x30] sm:$0xff]  ;;  %p526_p8 = scmp.ne.s32.totalorder %s774_s30, %s525_s9  ;;  %s612_s10 = smov [#allocation5]  }
  0x3e   : > { %v233_v10 = vld [vmem:[%s195_s21 + $0x20] sm:$0xff]  ;;  %v275_v11 = vadd.f32 %v273_v2, %v265_v3  ;;  %v267_v12 = vadd.f32 %v419_v8, %v231_v6  ;;  %v268_v13 = vadd.f32 %v419_v8, %v232_v9  ;;  %v276_v17 = vadd.f32 %v274_v5, %v266_v7  ;;  %v236_v21 = vld [vmem:[%s195_s21 + $0x38] sm:$0xff]  ;;  %s292_s21 = scalar_lea.sflag [#allocation4], %s747_s11  ;;  %s529_s22 = sshll.u32 %s612_s10, 4  ;;  %s530_s22 = int_to_ptr.vmem [resolvable:$false] %s529_s22 }
  0x3f   : > { %v269_v18 = vadd.f32 %v420_v14, %v233_v10  ;;  %v270_v19 = vadd.f32 %v420_v14, %v234_v15  ;;  %v421_v20 = vld [vmem:[%s829_s1 + $0x3] ss:$0 sm:$0xff]  ;;  %p527_p11 = pnand %p526_p8, %p839_p9  ;;  %s531_s23 = scalar_lea.vmem %s530_s22, 2048 }
  0x40   : > { %283 = vst [vmem:[%s221_s29] sm:$0xff] %v275_v11  ;;  %v277_v22 = vadd.f32 %v273_v2, %v267_v12  ;;  %v278_v23 = vadd.f32 %v274_v5, %v268_v13  ;;  %v271_v24 = vadd.f32 %v421_v20, %v235_v16  ;;  %v272_v25 = vadd.f32 %v421_v20, %v236_v21  ;;  %p532_p6 = scmp.lt.s32.totalorder %s774_s30, %s530_s22  ;;  %p533_p13 = scmp.lt.s32.totalorder %s531_s23, %s525_s9 }
  0x41   : > { %284 = vst [vmem:[%s221_s29 + $0x8] sm:$0xff] %v276_v17  ;;  %v279_v26 = vadd.f32 %v273_v2, %v269_v18  ;;  %v280_v27 = vadd.f32 %v274_v5, %v270_v19  ;;  %p528_p0 = pneg %p527_p11 }
  0x42   : > { %285 = vst [vmem:[%s221_s29 + $0x10] sm:$0xff] %v277_v22  ;;  %286 = vst [vmem:[%s221_s29 + $0x18] sm:$0xff] %v278_v23  ;;  %v281_v28 = vadd.f32 %v273_v2, %v271_v24  ;;  %v282_v29 = vadd.f32 %v274_v5, %v272_v25  ;;  %p534_p2 = por %p533_p13, %p532_p6 }
  0x43   : > { %287 = vst [vmem:[%s221_s29 + $0x20] sm:$0xff] %v279_v26  ;;  %288 = vst [vmem:[%s221_s29 + $0x28] sm:$0xff] %v280_v27 }
  0x44   : > { %289 = vst [vmem:[%s221_s29 + $0x30] sm:$0xff] %v281_v28  ;;  %290 = vst [vmem:[%s221_s29 + $0x38] sm:$0xff] %v282_v29  ;;  %p535_p5 = pnand %p534_p2, %p528_p0 }
  0x46   : > { %538 = shalt.err (!%p535_p5)
}
  0x47   : > { %s539_s24 = scalar_lea.hbm %s779_s8, 1024  ;;  %s543_s4 = scalar_lea.hbm %s831_s3, 2048 }
  0x48   : > { %p540_p4 = scmp.ne.s32.totalorder %s779_s8, %s539_s24  ;;  %p544_p12 = scmp.lt.u32.totalorder %s779_s8, %s831_s3 }
  0x49   : > { %p545_p1 = scmp.lt.u32.totalorder %s543_s4, %s539_s24  ;;  %p547_p8 = scmp.lt.u32.totalorder %s539_s24, %s779_s8 }
  0x4a   : > { %p541_p7 = pnand %p540_p4, %p839_p9 }
  0x4b   : > { %p546_p3 = por %p545_p1, %p544_p12 }
  0x4c   : > { %p542_p10 = pneg %p541_p7 }
  0x4d   : > { %p548_p11 = por %p547_p8, %p546_p3 }
  0x4f   : > { %p549_p0 = pnand %p548_p11, %p542_p10 }
  0x51   : > { %552 = shalt.err (!%p549_p0)
}
  0x52   : > { %s613_s19 = smov 128   ;;  %s614_s6 = smov 8  }
  0x53   : > { %431 = dma.vmem_to_hbm [thread:$0]  (%p839_p9), %s774_s30, 1024, %s779_s8, %s292_s21, %s613_s19, %s613_s19, %s614_s6  }
  0x54 PF: > { %s323_s15 = sand.u32 1, %s587_s12   ;;  %p840_p6 = scmp.ne.s32.totalorder %s836_s27, 0 }
  0x55   : > { %p841_p13 = scmp.ge.s32.totalorder %s607_s17, 2  ;;  %s324_s18 = scalar_lea.sflag [#allocation4], %s323_s15 }
  0x57   : > { %p438_p2 = pnand %p841_p13, %p840_p6 }
  0x59   : > { %582 = dma.done.wait (!%p438_p2), %s324_s18, 1024  }
  0x5a   : > { %584 = vsyncadd (!%p438_p2), %s324_s18, 4294966272  ;;  %s19_s17 = sadd.s32 1, %s607_s17   ;;  %s842_s12 = smov %s591_s13 }
  0x5b   : > { %p16_p5 = scmp.ge.s32.totalorder %s19_s17, 4   ;;  %s843_s13 = smov %s595_s14 }
  0x5c   : > { %s844_s14 = smov %s691_s26  ;;  %s845_s15 = smov %s603_s16 }
  0x5d   : > { %s846_s16 = smov %s848_s20  ;;  %18 = sbr.rel (!%p16_p5) target bundleno = 6 (0x6), region = 80 }
  0x64   :  { %329 = vsyncpa [#allocation3], 1 }
  0x65   :  { %331 = vsyncpa [#allocation3 + $0x1], 1 }
  0x66   :  { %332 = vsyncpa [#allocation4], 1 }
  0x67   :  { %334 = vsyncpa [#allocation4 + $0x1], 1 }

</bundles_post_ra>
